<compile_context>
chip_gen: v7x
topology: tpu7x:2x2x1
jax: 0.10.0
libtpu: 0.0.40
codegen_flags: <defaults>
</compile_context>

<pallas_src>
import functools

import jax
import jax.numpy as jnp
from jax.experimental import pallas as pl
from jax.experimental.pallas import tpu as pltpu


K_IN = 784     # true input features (left unpadded; Mosaic pads K internally)
H1 = 128       # fc1 out (already lane-dense)
H2_PAD = 128   # fc2 out 64 -> 128 (zero-padded; matching w3 rows are zero)
C_PAD = 128    # classes 10 -> 128 (padded logits carry -1e30 via b3)
NUM_CLASSES = 10


def _round_up(n, m):
    return ((n + m - 1) // m) * m


def _mlp_kernel(x_ref, w1_ref, b1_ref, w2_ref, b2_ref, w3_ref, b3_ref, o_ref):
    # x tile: (TB, 784) f32 streamed from HBM; cast to bf16 in-register.
    x = x_ref[...].astype(jnp.bfloat16)

    h1 = jnp.dot(x, w1_ref[...], preferred_element_type=jnp.float32) + b1_ref[...]
    h1 = jnp.maximum(h1, 0.0).astype(jnp.bfloat16)

    h2 = jnp.dot(h1, w2_ref[...], preferred_element_type=jnp.float32) + b2_ref[...]
    h2 = jnp.maximum(h2, 0.0).astype(jnp.bfloat16)

    # Padded class lanes get exactly -1e30 from b3 (padded w3 cols are zero),
    # so no in-kernel iota/where mask is needed.
    logits = jnp.dot(h2, w3_ref[...], preferred_element_type=jnp.float32) + b3_ref[...]

    # Numerically stable softmax over the class (lane) axis.
    m = jnp.max(logits, axis=-1, keepdims=True)
    e = jnp.exp(logits - m)                      # padded lanes underflow to 0
    s = jnp.sum(e, axis=-1, keepdims=True)
    o_ref[...] = (e * pl.reciprocal(s, approx=True)).astype(o_ref.dtype)


def prepare_params(params):
    """One-time pad/cast of the weights (keep out of the per-call jit path)."""
    w1 = params["w1"].astype(jnp.bfloat16)                                # (784, 128)
    b1 = params["b1"].astype(jnp.float32).reshape(1, H1)                  # (1, 128)
    w2 = jnp.zeros((H1, H2_PAD), jnp.bfloat16).at[:, :64].set(
        params["w2"].astype(jnp.bfloat16))
    b2 = jnp.zeros((1, H2_PAD), jnp.float32).at[:, :64].set(
        params["b2"].reshape(1, -1).astype(jnp.float32))
    w3 = jnp.zeros((H2_PAD, C_PAD), jnp.bfloat16).at[:64, :NUM_CLASSES].set(
        params["w3"].astype(jnp.bfloat16))
    # Bake the class mask into b3: finite -1e30 (not -inf) on padded lanes.
    b3 = jnp.full((1, C_PAD), -1e30, jnp.float32).at[:, :NUM_CLASSES].set(
        params["b3"].reshape(1, -1).astype(jnp.float32))
    return {"w1": w1, "b1": b1, "w2": w2, "b2": b2, "w3": w3, "b3": b3}


@functools.partial(jax.jit, static_argnames=("block_b",))
def mynetwork_f_forward(x, prep, *, block_b=2048):
    """x: (B, 784) float32 (bf16 also accepted). prep: output of prepare_params."""
    B = x.shape[0]
    pB8 = _round_up(B, 8)

    # Batch tile: multiple of 8 sublanes; guarantee >= 2 grid steps when the
    # batch allows it so the "parallel" axis spans both TensorCores on v7x.
    if pB8 <= block_b:
        TB = pB8 if pB8 <= 8 else _round_up(-(-pB8 // 2), 8)
    else:
        TB = block_b
    grid = (pl.cdiv(B, TB),)   # ragged last tile handled by Pallas masking

    w1, b1 = prep["w1"], prep["b1"]
    w2, b2 = prep["w2"], prep["b2"]
    w3, b3 = prep["w3"], prep["b3"]

    # Resident (constant index_map) specs for weights / biases.
    resident = lambda a: pl.BlockSpec(a.shape, lambda i: (0, 0))

    cost = pl.CostEstimate(
        flops=2 * B * (K_IN * H1 + H1 * H2_PAD + H2_PAD * C_PAD),
        transcendentals=B * C_PAD,
        bytes_accessed=(x.size * x.dtype.itemsize
                        + (w1.size + w2.size + w3.size) * 2
                        + (b1.size + b2.size + b3.size) * 4
                        + B * C_PAD * 2),
    )

    out = pl.pallas_call(
        _mlp_kernel,
        out_shape=jax.ShapeDtypeStruct((B, C_PAD), jnp.bfloat16),
        grid=grid,
        in_specs=[
            pl.BlockSpec((TB, K_IN), lambda i: (i, 0)),   # x streamed over batch
            resident(w1), resident(b1),
            resident(w2), resident(b2),
            resident(w3), resident(b3),
        ],
        out_specs=pl.BlockSpec((TB, C_PAD), lambda i: (i, 0)),
        compiler_params=pltpu.CompilerParams(
            dimension_semantics=("parallel",),     # shard batch across TCs (v7x)
            vmem_limit_bytes=32 << 20,
        ),
        cost_estimate=cost,
    )(x, w1, b1, w2, b2, w3, b3)

    # Slice off padded class lanes; return f32 like the PyTorch module.
    return out[:, :NUM_CLASSES].astype(jnp.float32)


def init_params(key):
    """Deterministic init mirroring nn.Linear's U(-1/sqrt(fan_in), 1/sqrt(fan_in))."""
    def linear(key, fan_in, fan_out):
        kw, kb = jax.random.split(key)
        bound = 1.0 / jnp.sqrt(fan_in)
        # stored as (in, out) so the kernel computes x @ W (== PyTorch x @ W.T)
        w = jax.random.uniform(kw, (fan_in, fan_out), jnp.float32, -bound, bound)
        b = jax.random.uniform(kb, (1, fan_out), jnp.float32, -bound, bound)
        return w, b

    k1, k2, k3 = jax.random.split(key, 3)
    w1, b1 = linear(k1, 784, 128)
    w2, b2 = linear(k2, 128, 64)
    w3, b3 = linear(k3, 64, 10)
    return {"w1": w1, "b1": b1, "w2": w2, "b2": b2, "w3": w3, "b3": b3}


def _reference_f32(x, p):
    h1 = jnp.maximum(x @ p["w1"] + p["b1"], 0.0)
    h2 = jnp.maximum(h1 @ p["w2"] + p["b2"], 0.0)
    return jax.nn.softmax(h2 @ p["w3"] + p["b3"], axis=1)


if __name__ == "__main__":
    key = jax.random.PRNGKey(0)
    kx, kp = jax.random.split(key)
    B = 8
    x = jax.random.normal(kx, (B, 784), jnp.float32)
    params = init_params(kp)
    prep = prepare_params(params)   # one-time weight pad/cast

    out = jax.block_until_ready(mynetwork_f_forward(x, prep))
    ref = _reference_f32(x, params)

    assert out.shape == (B, NUM_CLASSES)
    assert out.dtype == jnp.float32
    # bf16 matmuls + bf16 softmax output -> loose tolerance vs the f32 reference.
    assert jnp.allclose(out, ref, atol=3e-2, rtol=3e-2), float(
        jnp.max(jnp.abs(out - ref)))
    # Softmax rows still sum to ~1 (padded lanes excluded; bf16-rounded probs).
    assert jnp.allclose(jnp.sum(out, axis=1), 1.0, atol=1e-2)
    print("KERNEL_OK")
</pallas_src>

<mosaic_0001>
module attributes {stable_mosaic.version = 11 : i64} {
  func.func @_mlp_kernel(%arg0: i32, %arg1: memref<8x784xf32, #tpu.memory_space<vmem>>, %arg2: memref<784x128xbf16, #tpu.memory_space<vmem>>, %arg3: memref<1x128xf32, #tpu.memory_space<vmem>>, %arg4: memref<128x128xbf16, #tpu.memory_space<vmem>>, %arg5: memref<1x128xf32, #tpu.memory_space<vmem>>, %arg6: memref<128x128xbf16, #tpu.memory_space<vmem>>, %arg7: memref<1x128xf32, #tpu.memory_space<vmem>>, %arg8: memref<8x128xbf16, #tpu.memory_space<vmem>>) attributes {dimension_semantics = [#tpu.dimension_semantics<parallel>], iteration_bounds = array<i64: 1>, scalar_prefetch = 0 : i64, scratch_operands = 0 : i64, tpu.core_type = #tpu.core_type<tc>, window_params = [{transform_indices = @transform_0, window_bounds = array<i64: 8, 784>}, {pipeline_mode = #tpu.pipeline_mode<synchronous>, transform_indices = @transform_1, window_bounds = array<i64: 784, 128>}, {pipeline_mode = #tpu.pipeline_mode<synchronous>, transform_indices = @transform_2, window_bounds = array<i64: 1, 128>}, {pipeline_mode = #tpu.pipeline_mode<synchronous>, transform_indices = @transform_3, window_bounds = array<i64: 128, 128>}, {pipeline_mode = #tpu.pipeline_mode<synchronous>, transform_indices = @transform_4, window_bounds = array<i64: 1, 128>}, {pipeline_mode = #tpu.pipeline_mode<synchronous>, transform_indices = @transform_5, window_bounds = array<i64: 128, 128>}, {pipeline_mode = #tpu.pipeline_mode<synchronous>, transform_indices = @transform_6, window_bounds = array<i64: 1, 128>}, {transform_indices = @transform_7, window_bounds = array<i64: 8, 128>}]} {
    %c0 = arith.constant 0 : index
    %c0_0 = arith.constant 0 : index
    %0 = vector.load %arg1[%c0, %c0_0] : memref<8x784xf32, #tpu.memory_space<vmem>>, vector<8x784xf32>
    %1 = arith.truncf %0 : vector<8x784xf32> to vector<8x784xbf16>
    %c0_1 = arith.constant 0 : index
    %c0_2 = arith.constant 0 : index
    %2 = vector.load %arg2[%c0_1, %c0_2] : memref<784x128xbf16, #tpu.memory_space<vmem>>, vector<784x128xbf16>
    %cst = arith.constant dense<0.000000e+00> : vector<8x128xf32>
    %3 = tpu.matmul %1, %2, %cst {dimension_numbers = #tpu.dot_dimension_numbers<[1], [0], [0], [1], [0, 0, 1, 1], [], []>} : vector<8x784xbf16>, vector<784x128xbf16>, vector<8x128xf32> -> vector<8x128xf32>
    %c0_3 = arith.constant 0 : index
    %c0_4 = arith.constant 0 : index
    %4 = vector.load %arg3[%c0_3, %c0_4] : memref<1x128xf32, #tpu.memory_space<vmem>>, vector<1x128xf32>
    %5 = vector.broadcast %4 : vector<1x128xf32> to vector<8x128xf32>
    %6 = arith.addf %3, %5 : vector<8x128xf32>
    %cst_5 = arith.constant 0.000000e+00 : f32
    %7 = vector.broadcast %cst_5 : f32 to vector<8x128xf32>
    %8 = arith.maximumf %6, %7 : vector<8x128xf32>
    %9 = arith.truncf %8 : vector<8x128xf32> to vector<8x128xbf16>
    %c0_6 = arith.constant 0 : index
    %c0_7 = arith.constant 0 : index
    %10 = vector.load %arg4[%c0_6, %c0_7] : memref<128x128xbf16, #tpu.memory_space<vmem>>, vector<128x128xbf16>
    %cst_8 = arith.constant dense<0.000000e+00> : vector<8x128xf32>
    %11 = tpu.matmul %9, %10, %cst_8 {dimension_numbers = #tpu.dot_dimension_numbers<[1], [0], [0], [1], [0, 0, 1, 1], [], []>} : vector<8x128xbf16>, vector<128x128xbf16>, vector<8x128xf32> -> vector<8x128xf32>
    %c0_9 = arith.constant 0 : index
    %c0_10 = arith.constant 0 : index
    %12 = vector.load %arg5[%c0_9, %c0_10] : memref<1x128xf32, #tpu.memory_space<vmem>>, vector<1x128xf32>
    %13 = vector.broadcast %12 : vector<1x128xf32> to vector<8x128xf32>
    %14 = arith.addf %11, %13 : vector<8x128xf32>
    %cst_11 = arith.constant 0.000000e+00 : f32
    %15 = vector.broadcast %cst_11 : f32 to vector<8x128xf32>
    %16 = arith.maximumf %14, %15 : vector<8x128xf32>
    %17 = arith.truncf %16 : vector<8x128xf32> to vector<8x128xbf16>
    %c0_12 = arith.constant 0 : index
    %c0_13 = arith.constant 0 : index
    %18 = vector.load %arg6[%c0_12, %c0_13] : memref<128x128xbf16, #tpu.memory_space<vmem>>, vector<128x128xbf16>
    %cst_14 = arith.constant dense<0.000000e+00> : vector<8x128xf32>
    %19 = tpu.matmul %17, %18, %cst_14 {dimension_numbers = #tpu.dot_dimension_numbers<[1], [0], [0], [1], [0, 0, 1, 1], [], []>} : vector<8x128xbf16>, vector<128x128xbf16>, vector<8x128xf32> -> vector<8x128xf32>
    %c0_15 = arith.constant 0 : index
    %c0_16 = arith.constant 0 : index
    %20 = vector.load %arg7[%c0_15, %c0_16] : memref<1x128xf32, #tpu.memory_space<vmem>>, vector<1x128xf32>
    %21 = vector.broadcast %20 : vector<1x128xf32> to vector<8x128xf32>
    %22 = arith.addf %19, %21 : vector<8x128xf32>
    %cst_17 = arith.constant dense<0xFF800000> : vector<8xf32>
    %23 = vector.multi_reduction <maximumf>, %22, %cst_17 [1] : vector<8x128xf32> to vector<8xf32>
    %24 = vector.shape_cast %23 : vector<8xf32> to vector<8x1xf32>
    %25 = vector.broadcast %24 : vector<8x1xf32> to vector<8x128xf32>
    %26 = arith.subf %22, %25 : vector<8x128xf32>
    %27 = math.exp %26 : vector<8x128xf32>
    %cst_18 = arith.constant dense<0.000000e+00> : vector<8xf32>
    %28 = vector.multi_reduction <add>, %27, %cst_18 [1] : vector<8x128xf32> to vector<8xf32>
    %29 = vector.shape_cast %28 : vector<8xf32> to vector<8x1xf32>
    %30 = tpu.reciprocal %29 {approx = true} : vector<8x1xf32> -> vector<8x1xf32>
    %31 = vector.broadcast %30 : vector<8x1xf32> to vector<8x128xf32>
    %32 = arith.mulf %27, %31 : vector<8x128xf32>
    %33 = arith.truncf %32 : vector<8x128xf32> to vector<8x128xbf16>
    %c0_19 = arith.constant 0 : index
    %c0_20 = arith.constant 0 : index
    %34 = vector.load %arg8[%c0_19, %c0_20] : memref<8x128xbf16, #tpu.memory_space<vmem>>, vector<8x128xbf16>
    tpu.vector_store %arg8[%c0_19, %c0_20], %33 {strides = array<i32>} : memref<8x128xbf16, #tpu.memory_space<vmem>>, vector<8x128xbf16>,
    return
  }
  func.func @transform_0(%arg0: i32) -> (i32, i32) {
    %c0_i32 = arith.constant 0 : i32
    %c0_i32_0 = arith.constant 0 : i32
    return %arg0, %c0_i32 : i32, i32
  }
  func.func @transform_1(%arg0: i32) -> (i32, i32) {
    %c0_i32 = arith.constant 0 : i32
    %c0_i32_0 = arith.constant 0 : i32
    %c0_i32_1 = arith.constant 0 : i32
    return %c0_i32, %c0_i32_0 : i32, i32
  }
  func.func @transform_2(%arg0: i32) -> (i32, i32) {
    %c0_i32 = arith.constant 0 : i32
    %c0_i32_0 = arith.constant 0 : i32
    %c0_i32_1 = arith.constant 0 : i32
    return %c0_i32, %c0_i32_0 : i32, i32
  }
  func.func @transform_3(%arg0: i32) -> (i32, i32) {
    %c0_i32 = arith.constant 0 : i32
    %c0_i32_0 = arith.constant 0 : i32
    %c0_i32_1 = arith.constant 0 : i32
    return %c0_i32, %c0_i32_0 : i32, i32
  }
  func.func @transform_4(%arg0: i32) -> (i32, i32) {
    %c0_i32 = arith.constant 0 : i32
    %c0_i32_0 = arith.constant 0 : i32
    %c0_i32_1 = arith.constant 0 : i32
    return %c0_i32, %c0_i32_0 : i32, i32
  }
  func.func @transform_5(%arg0: i32) -> (i32, i32) {
    %c0_i32 = arith.constant 0 : i32
    %c0_i32_0 = arith.constant 0 : i32
    %c0_i32_1 = arith.constant 0 : i32
    return %c0_i32, %c0_i32_0 : i32, i32
  }
  func.func @transform_6(%arg0: i32) -> (i32, i32) {
    %c0_i32 = arith.constant 0 : i32
    %c0_i32_0 = arith.constant 0 : i32
    %c0_i32_1 = arith.constant 0 : i32
    return %c0_i32, %c0_i32_0 : i32, i32
  }
  func.func @transform_7(%arg0: i32) -> (i32, i32) {
    %c0_i32 = arith.constant 0 : i32
    %c0_i32_0 = arith.constant 0 : i32
    return %arg0, %c0_i32 : i32, i32
  }
}

</mosaic_0001>

<bundles_post_ra>
// kernel: mynetwork_f_forward.1
= control target key start
LH: loop header
LB: loop body
LE: loop exit
PB: predicated region body
PF: predicated region fallthrough
CT: control target
= control target key end

     0   :  { %12 = vsyncpa [#allocation3], 0  ;;  %s1413_s0 = inlined_call_operand.hbm [shape: f32[8,784], index: 0, kind: input, shape index: {}]   ;;  %s1414_s1 = inlined_call_operand.hbm [shape: bf16[784,128], index: 1, kind: input, shape index: {}]   ;;  %s1415_s2 = inlined_call_operand.vmem [shape: f32[1,128], index: 2, kind: input, shape index: {}]   ;;  %s1416_s3 = inlined_call_operand.hbm [shape: bf16[128,128], index: 3, kind: input, shape index: {}]   ;;  %s1417_s4 = inlined_call_operand.vmem [shape: f32[1,128], index: 4, kind: input, shape index: {}]   ;;  %s1418_s5 = inlined_call_operand.hbm [shape: bf16[128,128], index: 5, kind: input, shape index: {}]   ;;  %s1419_s6 = inlined_call_operand.vmem [shape: f32[1,128], index: 6, kind: input, shape index: {}]   ;;  %s1420_s7 = inlined_call_operand.vmem [shape: bf16[8,128], index: 7, kind: output, shape index: {}]  }
   0x1   :  { %13 = vsyncpa [#allocation5], 0 }
   0x2   :  { %14 = vsyncpa [#allocation8], 0  ;;  %s1273_s24 = smov [#allocation4]   ;;  %s1179_s28 = scalar_lea.hbm %s1414_s1, 6272 }
   0x3   :  { %s30_s25 = sshll.u32 %s1273_s24, 4  ;;  %p1180_p0 = scmp.ne.s32.totalorder %s1414_s1, %s1179_s28  ;;  %s31_s25 = int_to_ptr.vmem [resolvable:$true] %s30_s25 }
   0x4   :  { %p1183_p1 = scmp.lt.u32.totalorder %s1179_s28, %s1414_s1 }
   0x6   :  { %p1185_p2 = pnand %p1183_p1, %p1180_p0 }
   0x8   :  { %1188 = shalt.err (!%p1185_p2)
}
   0x9   :  { %s1189_s10 = scalar_lea.vmem %s31_s25, 6272  ;;  %p1194_p4 = scmp.lt.s32.totalorder %s31_s25, %s31_s25 }
   0xa   :  { %p1190_p3 = scmp.ne.s32.totalorder %s31_s25, %s1189_s10  ;;  %p1195_p5 = scmp.lt.s32.totalorder %s1189_s10, %s1189_s10 }
   0xc   :  { %p1196_p6 = por %p1195_p5, %p1194_p4 }
   0xe   :  { %p1197_p7 = pnand %p1196_p6, %p1190_p3 }
  0x10   :  { %1200 = shalt.err (!%p1197_p7)
}
  0x11   :  { %s1274_s11 = smov 64   ;;  %s1275_s12 = smov 4  }
  0x12   :  { %36 = dma.hbm_to_vmem [thread:$0]  %s1414_s1, 6272, %s31_s25, [#allocation5], %s1274_s11, %s1274_s11, %s1275_s12  }
  0x13   :  { %s1276_s15 = smov [#allocation2]   ;;  %s1277_s17 = smov [#allocation6]  }
  0x14   :  { %s21_s16 = sshll.u32 %s1276_s15, 4  ;;  %s44_s18 = sshll.u32 %s1277_s17, 4  ;;  %s22_s16 = int_to_ptr.vmem [resolvable:$true] %s21_s16  ;;  %s45_s18 = int_to_ptr.vmem [resolvable:$true] %s44_s18 }
  0x15   :  { %s1201_s21 = scalar_lea.hbm %s1413_s0, 896 }
  0x16   :  { %p1202_p8 = scmp.ne.s32.totalorder %s1413_s0, %s1201_s21  ;;  %p1205_p9 = scmp.lt.u32.totalorder %s1201_s21, %s1413_s0 }
  0x18   :  { %p1207_p10 = pnand %p1205_p9, %p1202_p8 }
  0x1a   :  { %1210 = shalt.err (!%p1207_p10)
}
  0x1b   :  { %s1211_s1 = scalar_lea.vmem %s22_s16, 896  ;;  %p1216_p12 = scmp.lt.s32.totalorder %s22_s16, %s22_s16 }
  0x1c   :  { %p1212_p11 = scmp.ne.s32.totalorder %s22_s16, %s1211_s1  ;;  %p1217_p13 = scmp.lt.s32.totalorder %s1211_s1, %s1211_s1 }
  0x1e   :  { %p1218_p0 = por %p1217_p13, %p1216_p12 }
  0x20   :  { %p1219_p1 = pnand %p1218_p0, %p1212_p11 }
  0x22   :  { %1222 = shalt.err (!%p1219_p1)
}
  0x23   :  { %24 = dma.hbm_to_vmem [thread:$0]  %s1413_s0, 896, %s22_s16, [#allocation3]  }
  0x24   :  { %s1223_s30 = scalar_lea.hbm %s1416_s3, 1024 }
  0x25   :  { %p1224_p2 = scmp.ne.s32.totalorder %s1416_s3, %s1223_s30  ;;  %p1227_p3 = scmp.lt.u32.totalorder %s1223_s30, %s1416_s3 }
  0x27   :  { %p1229_p4 = pnand %p1227_p3, %p1224_p2 }
  0x29   :  { %1232 = shalt.err (!%p1229_p4)
}
  0x2a   :  { %s1233_s14 = scalar_lea.vmem %s45_s18, 1024  ;;  %p1238_p6 = scmp.lt.s32.totalorder %s45_s18, %s45_s18 }
  0x2b   :  { %p1234_p5 = scmp.ne.s32.totalorder %s45_s18, %s1233_s14  ;;  %p1239_p7 = scmp.lt.s32.totalorder %s1233_s14, %s1233_s14 }
  0x2d   :  { %p1240_p8 = por %p1239_p7, %p1238_p6 }
  0x2f   :  { %p1241_p9 = pnand %p1240_p8, %p1234_p5 }
  0x31   :  { %1244 = shalt.err (!%p1241_p9)
}
  0x32   :  { %50 = dma.hbm_to_vmem [thread:$0]  %s1416_s3, 1024, %s45_s18, [#allocation5], %s1274_s11, %s1274_s11, %s1275_s12  }
  0x33   :  { %s1278_s16 = smov [#allocation7]   ;;  %s1245_s21 = scalar_lea.hbm %s1418_s5, 1024 }
  0x34   :  { %s58_s17 = sshll.u32 %s1278_s16, 4  ;;  %p1246_p10 = scmp.ne.s32.totalorder %s1418_s5, %s1245_s21  ;;  %s59_s17 = int_to_ptr.vmem [resolvable:$true] %s58_s17 }
  0x35   :  { %p1249_p11 = scmp.lt.u32.totalorder %s1245_s21, %s1418_s5 }
  0x37   :  { %p1251_p12 = pnand %p1249_p11, %p1246_p10 }
  0x39   :  { %1254 = shalt.err (!%p1251_p12)
}
  0x3a   :  { %s1255_s1 = scalar_lea.vmem %s59_s17, 1024  ;;  %p1260_p0 = scmp.lt.s32.totalorder %s59_s17, %s59_s17 }
  0x3b   :  { %p1256_p13 = scmp.ne.s32.totalorder %s59_s17, %s1255_s1  ;;  %p1261_p1 = scmp.lt.s32.totalorder %s1255_s1, %s1255_s1 }
  0x3d   :  { %p1262_p2 = por %p1261_p1, %p1260_p0 }
  0x3f   :  { %p1263_p3 = pnand %p1262_p2, %p1256_p13 }
  0x41   :  { %1266 = shalt.err (!%p1263_p3)
}
  0x42   :  { %64 = dma.hbm_to_vmem [thread:$0]  %s1418_s5, 1024, %s59_s17, [#allocation8], %s1274_s11, %s1274_s11, %s1275_s12  }
  0x43   :  { %1267 = dma.done.wait [#allocation3], 896  }
  0x44   :  { %1268 = vsyncadd [#allocation3], 4294966400 }
  0x45   :  { %1269 = dma.done.wait [#allocation5], 7296  }
  0x46   :  { %1270 = vsyncadd [#allocation5], 4294960000 }
  0x47   :  { %1271 = dma.done.wait [#allocation8], 1024  }
  0x48   :  { %1272 = vsyncadd [#allocation8], 4294966272  ;;  %v1110_v0 = vld [vmem:[#allocation4 + $0x40] sm:$0xff]   ;;  %v1114_v4 = vld [vmem:[#allocation4 + $0x48] sm:$0xff]   ;;  %v1279_v44 = vmov 0.0   ;;  %vm1280_vm0 = vmmov 0  }
  0x49   :  { %v1111_v1 = vld [vmem:[#allocation4] sm:$0xff]   ;;  %970 = vmatprep.subr.bf16.mxu0 %v1110_v0  ;;  %v1115_v5 = vld [vmem:[#allocation4 + $0x8] sm:$0xff]   ;;  %v1118_v8 = vld [vmem:[#allocation4 + $0x50] sm:$0xff]   ;;  %vm493_vm1 = vcmask 130048  }
  0x4a   :  { %v1112_v2 = vld [vmem:[#allocation4 + $0xc0] sm:$0xff]   ;;  %971 = vmatpush3.bf16.msra.mxu0 %v1111_v1  ;;  %v1116_v6 = vld [vmem:[#allocation4 + $0xc8] sm:$0xff]   ;;  %v1119_v9 = vld [vmem:[#allocation4 + $0x10] sm:$0xff]  }
  0x4b   :  { %v1113_v3 = vld [vmem:[#allocation4 + $0x80] sm:$0xff]   ;;  %992 = vmatprep.subr.bf16.mxu1 %v1112_v2  ;;  %972 = vmatprep.subr.bf16.mxu0 %v1114_v4  ;;  %v1117_v7 = vld [vmem:[#allocation4 + $0x88] sm:$0xff]   ;;  %v1120_v10 = vld [vmem:[#allocation4 + $0xd0] sm:$0xff]  }
  0x4c   :  { %993 = vmatpush3.bf16.msra.mxu1 %v1113_v3  ;;  %v1121_v11 = vld [vmem:[#allocation4 + $0x90] sm:$0xff]   ;;  %v1122_v12 = vld [vmem:[#allocation4 + $0x58] sm:$0xff]   ;;  %v1126_v16 = vld [vmem:[#allocation4 + $0x60] sm:$0xff]  }
  0x4d   :  { %994 = vmatprep.subr.bf16.mxu1 %v1116_v6  ;;  %v1123_v13 = vld [vmem:[#allocation4 + $0x18] sm:$0xff]   ;;  %v1127_v17 = vld [vmem:[#allocation4 + $0x20] sm:$0xff]   ;;  %v1130_v20 = vld [vmem:[#allocation4 + $0x68] sm:$0xff]  }
  0x4e   :  { %973 = vmatpush3.bf16.msra.mxu0 %v1115_v5  ;;  %v1124_v14 = vld [vmem:[#allocation4 + $0xd8] sm:$0xff]   ;;  %v1128_v18 = vld [vmem:[#allocation4 + $0xe0] sm:$0xff]   ;;  %v1131_v21 = vld [vmem:[#allocation4 + $0x28] sm:$0xff]  }
  0x4f   :  { %974 = vmatprep.subr.bf16.mxu0 %v1118_v8  ;;  %v1125_v15 = vld [vmem:[#allocation4 + $0x98] sm:$0xff]   ;;  %v1129_v19 = vld [vmem:[#allocation4 + $0xa0] sm:$0xff]   ;;  %v1132_v22 = vld [vmem:[#allocation4 + $0xe8] sm:$0xff]  }
  0x50   :  { %995 = vmatpush3.bf16.msra.mxu1 %v1117_v7  ;;  %v1133_v23 = vld [vmem:[#allocation4 + $0xa8] sm:$0xff]   ;;  %v1134_v24 = vld [vmem:[#allocation4 + $0x70] sm:$0xff]   ;;  %v1138_v28 = vld [vmem:[#allocation4 + $0x78] sm:$0xff]  }
  0x51   :  { %996 = vmatprep.subr.bf16.mxu1 %v1120_v10  ;;  %v1135_v25 = vld [vmem:[#allocation4 + $0x30] sm:$0xff]   ;;  %v1139_v29 = vld [vmem:[#allocation4 + $0x38] sm:$0xff]   ;;  %v80_v34 = vld [vmem:[#allocation2] sm:$0xff] }
  0x52   :  { %975 = vmatpush3.bf16.msra.mxu0 %v1119_v9  ;;  %v1136_v26 = vld [vmem:[#allocation4 + $0xf0] sm:$0xff]   ;;  %v1140_v30 = vld [vmem:[#allocation4 + $0xf8] sm:$0xff]   ;;  %v87_v35 = vpack.c.bf16 %v80_v34, %v80_v34  ;;  %v1142_v36 = vld [vmem:[#allocation4 + $0x140] sm:$0xff]  }
  0x53   :  { %976 = vmatprep.subr.bf16.mxu0 %v1122_v12  ;;  %v1137_v27 = vld [vmem:[#allocation4 + $0xb0] sm:$0xff]   ;;  %v1141_v33 = vld [vmem:[#allocation4 + $0xb8] sm:$0xff]   ;;  %v83_v37 = vld [vmem:[#allocation2 + $0x18] sm:$0xff] }
  0x54   :  { %997 = vmatpush3.bf16.msra.mxu1 %v1121_v11  ;;  %v81_v31 = vld [vmem:[#allocation2 + $0x8] sm:$0xff]  ;;  %v90_v38 = vpack.c.bf16 %v83_v37, %v83_v37  ;;  %v1143_v39 = vld [vmem:[#allocation4 + $0x100] sm:$0xff]   ;;  %v82_v40 = vld [vmem:[#allocation2 + $0x10] sm:$0xff] }
  0x55   :  { %998 = vmatprep.subr.bf16.mxu1 %v1124_v14  ;;  %v88_v32 = vpack.c.bf16 %v81_v31, %v81_v31  ;;  %v89_v41 = vpack.c.bf16 %v82_v40, %v82_v40  ;;  %v1144_v42 = vld [vmem:[#allocation4 + $0x148] sm:$0xff]   ;;  %v1146_v45 = vld [vmem:[#allocation4 + $0x150] sm:$0xff]   ;;  %v1148_v47 = vld [vmem:[#allocation4 + $0x158] sm:$0xff]  }
  0x56   :  { %977 = vmatpush3.bf16.msra.mxu0 %v1123_v13  ;;  %569 = vmatprep.mubr.bf16.mxu1 %v90_v38  ;;  %v1145_v43 = vld [vmem:[#allocation4 + $0x108] sm:$0xff]   ;;  %v1147_v46 = vld [vmem:[#allocation4 + $0x110] sm:$0xff]   ;;  %v1149_v48 = vld [vmem:[#allocation4 + $0x118] sm:$0xff]  }
  0x57   :  { %978 = vmatprep.subr.bf16.mxu0 %v1126_v16  ;;  %529 = vmatprep.mubr.bf16.mxu0 %v88_v32  ;;  %v1150_v49 = vld [vmem:[#allocation4 + $0x160] sm:$0xff]   ;;  %v1152_v51 = vld [vmem:[#allocation4 + $0x168] sm:$0xff]   ;;  %v85_v54 = vld [vmem:[#allocation2 + $0x28] sm:$0xff] }
  0x58   :  { %999 = vmatpush3.bf16.msra.mxu1 %v1125_v15  ;;  %v1151_v50 = vld [vmem:[#allocation4 + $0x120] sm:$0xff]   ;;  %v1153_v52 = vld [vmem:[#allocation4 + $0x128] sm:$0xff]   ;;  %v1154_v55 = vld [vmem:[#allocation4 + $0x170] sm:$0xff]   ;;  %v92_v56 = vpack.c.bf16 %v85_v54, %v85_v54 }
  0x59   :  { %1000 = vmatprep.subr.bf16.mxu1 %v1128_v18  ;;  %v1158_v53 = vld [vmem:[#allocation4 + $0x180] sm:$0xff]   ;;  %v86_v57 = vld [vmem:[#allocation2 + $0x30] sm:$0xff]  ;;  %v1155_v59 = vld [vmem:[#allocation4 + $0x130] sm:$0xff]  }
  0x5a   :  { %979 = vmatpush3.bf16.msra.mxu0 %v1127_v17  ;;  %v93_v58 = vpack.c.bf16 %v86_v57, %v86_v57  ;;  %v1156_v60 = vld [vmem:[#allocation4 + $0x178] sm:$0xff]   ;;  %v84_v62 = vld [vmem:[#allocation2 + $0x20] sm:$0xff]  ;;  %v1160_v1 = vld [vmem:[#allocation6 + $0x8] sm:$0xff]  }
  0x5b   :  { %980 = vmatprep.subr.bf16.mxu0 %v1130_v20  ;;  %v1157_v61 = vld [vmem:[#allocation4 + $0x138] sm:$0xff]   ;;  %v91_v63 = vpack.c.bf16 %v84_v62, %v84_v62  ;;  %v1159_v0 = vld [vmem:[#allocation6] sm:$0xff]   ;;  %v1162_v3 = vld [vmem:[#allocation6 + $0x18] sm:$0xff]  }
  0x5c   :  { %1001 = vmatpush3.bf16.msra.mxu1 %v1129_v19  ;;  %v1161_v2 = vld [vmem:[#allocation6 + $0x10] sm:$0xff]   ;;  %v1163_v4 = vld [vmem:[#allocation6 + $0x20] sm:$0xff]   ;;  %v1164_v5 = vld [vmem:[#allocation6 + $0x28] sm:$0xff]  }
  0x5d   :  { %1002 = vmatprep.subr.bf16.mxu1 %v1132_v22  ;;  %v1165_v6 = vld [vmem:[#allocation6 + $0x30] sm:$0xff]   ;;  %v1166_v7 = vld [vmem:[#allocation6 + $0x38] sm:$0xff]   ;;  %v1167_v8 = vld [vmem:[#allocation7] sm:$0xff]  }
  0x5e   :  { %981 = vmatpush3.bf16.msra.mxu0 %v1131_v21  ;;  %v1168_v9 = vld [vmem:[#allocation7 + $0x8] sm:$0xff]   ;;  %v1169_v10 = vld [vmem:[#allocation7 + $0x10] sm:$0xff]   ;;  %v1170_v11 = vld [vmem:[#allocation7 + $0x18] sm:$0xff]  }
  0x5f   :  { %982 = vmatprep.subr.bf16.mxu0 %v1134_v24  ;;  %v1171_v12 = vld [vmem:[#allocation7 + $0x20] sm:$0xff]   ;;  %v1172_v13 = vld [vmem:[#allocation7 + $0x28] sm:$0xff]   ;;  %v1173_v40 = vld [vmem:[#allocation7 + $0x30] sm:$0xff]  }
  0x60   :  { %1003 = vmatpush3.bf16.msra.mxu1 %v1133_v23  ;;  %v901_v15 = vld [vmem:[%s1415_s2] ss:$0 sm:$0xff] }
  0x61   :  { %1004 = vmatprep.subr.bf16.mxu1 %v1136_v26 }
  0x62   :  { %983 = vmatpush3.bf16.msra.mxu0 %v1135_v25 }
  0x63   :  { %984 = vmatprep.subr.bf16.mxu0 %v1138_v28 }
  0x64   :  { %1005 = vmatpush3.bf16.msra.mxu1 %v1137_v27 }
  0x65   :  { %1006 = vmatprep.subr.bf16.mxu1 %v1140_v30 }
  0x66   :  { %985 = vmatpush3.bf16.msra.mxu0 %v1139_v29 }
  0x67   :  { %1014 = vmatprep.subr.bf16.mxu0 %v1142_v36 }
  0x68   :  { %1007 = vmatpush3.bf16.msra.mxu1 %v1141_v33 }
  0x69   :  { %530 = vmatmul.mubr.bf16.vlgmr.msra.gmra.mrb[0].mxu0 %v87_v35  ;;  %1056 = vmatprep.subr.bf16.mxu1 %v1279_v44 }
  0x6a   :  { %1015 = vmatpush3.bf16.msra.mxu0 %v1143_v39  ;;  %609 = vmatprep.mubr.bf16.mxu0 %v92_v56 }
  0x6b   :  { %570 = vmatmul.mubr.bf16.vlgmr.msra.gmra.mrb[0].mxu1 %v89_v41  ;;  %1016 = vmatprep.subr.bf16.mxu0 %v1144_v42  ;;  %v1174_v41 = vld [vmem:[#allocation7 + $0x38] sm:$0xff]   ;;  %v952_v42 = vld [vmem:[%s1417_s4] ss:$0 sm:$0xff] }
  0x6c   :  { %1058 = vmatprep.mubr.msk.bf16.mxu1 %vm1280_vm0, %v1279_v44  ;;  %1057 = vmatpush3.bf16.msra.mxu1 %v1158_v53 }
  0x6d   :  { %1062 = vmatprep.subr.bf16.mxu1 %v1279_v44 }
  0x6e   :  { %1017 = vmatpush3.bf16.msra.mxu0 %v1145_v43 }
  0x6f   :  { %1018 = vmatprep.subr.bf16.mxu0 %v1146_v45 }
  0x72   :  { %1019 = vmatpush3.bf16.msra.mxu0 %v1147_v46 }
  0x73   :  { %1020 = vmatprep.subr.bf16.mxu0 %v1148_v47  ;;  %1059 = vmatmul.mubr.msk.bf16.vlgmr.msra.gmra.mrb[4].mxu1 %vm493_vm1, %v93_v58 }
  0x74   :  { %1078 = vmatprep.mubr.msk.bf16.mxu1 %vm1280_vm0, %v1279_v44  ;;  %1063 = vmatpush3.bf16.msra.mxu1 %v1159_v0 }
  0x75   :  { %1064 = vmatprep.subr.bf16.mxu1 %v1279_v44 }
  0x76   :  { %1021 = vmatpush3.bf16.msra.mxu0 %v1149_v48 }
  0x77   :  { %1022 = vmatprep.subr.bf16.mxu0 %v1150_v49 }
  0x78   :  { %1065 = vmatpush3.bf16.msra.mxu1 %v1160_v1 }
  0x79   :  { %1066 = vmatprep.subr.bf16.mxu1 %v1279_v44 }
  0x7a   :  { %1023 = vmatpush3.bf16.msra.mxu0 %v1151_v50 }
  0x7b   :  { %1024 = vmatprep.subr.bf16.mxu0 %v1152_v51  ;;  %v961_v51 = vld [vmem:[%s1419_s6] ss:$0 sm:$0xff] }
  0x7c   :  { %1067 = vmatpush3.bf16.msra.mxu1 %v1161_v2 }
  0x7d   :  { %1068 = vmatprep.subr.bf16.mxu1 %v1279_v44 }
  0x7e   :  { %1025 = vmatpush3.bf16.msra.mxu0 %v1153_v52 }
  0x7f   :  { %1026 = vmatprep.subr.bf16.mxu0 %v1154_v55 }
  0x80   :  { %1069 = vmatpush3.bf16.msra.mxu1 %v1162_v3 }
  0x81   :  { %1070 = vmatprep.subr.bf16.mxu1 %v1279_v44 }
  0x82   :  { %1027 = vmatpush3.bf16.msra.mxu0 %v1155_v59 }
  0x83   :  { %1028 = vmatprep.subr.bf16.mxu0 %v1156_v60 }
  0x84   :  { %1071 = vmatpush3.bf16.msra.mxu1 %v1163_v4 }
  0x85   :  { %1072 = vmatprep.subr.bf16.mxu1 %v1279_v44 }
  0x86   :  { %1029 = vmatpush3.bf16.msra.mxu0 %v1157_v61 }
  0x87   :  { %1082 = vmatprep.subr.bf16.mxu0 %v1279_v44 }
  0x88   :  { %1073 = vmatpush3.bf16.msra.mxu1 %v1164_v5 }
  0x89   :  { %610 = vmatmul.mubr.bf16.vlgmr.msra.gmra.mrb[4].mxu0 %v91_v63  ;;  %1074 = vmatprep.subr.bf16.mxu1 %v1279_v44 }
  0x8a   :  { %1098 = vmatprep.mubr.msk.bf16.mxu0 %vm1280_vm0, %v1279_v44  ;;  %1083 = vmatpush3.bf16.msra.mxu0 %v1167_v8 }
  0x8b   :  { %1084 = vmatprep.subr.bf16.mxu0 %v1279_v44 }
  0x8c   :  { %1075 = vmatpush3.bf16.msra.mxu1 %v1165_v6 }
  0x8d   :  { %1076 = vmatprep.subr.bf16.mxu1 %v1279_v44 }
  0x8e   :  { %1085 = vmatpush3.bf16.msra.mxu0 %v1168_v9 }
  0x8f   :  { %1086 = vmatprep.subr.bf16.mxu0 %v1279_v44 }
  0x90   :  { %1077 = vmatpush3.bf16.msra.mxu1 %v1166_v7 }
  0x92   :  { %1087 = vmatpush3.bf16.msra.mxu0 %v1169_v10 }
  0x93   :  { %1088 = vmatprep.subr.bf16.mxu0 %v1279_v44 }
  0x96   :  { %1089 = vmatpush3.bf16.msra.mxu0 %v1170_v11 }
  0x97   :  { %1090 = vmatprep.subr.bf16.mxu0 %v1279_v44 }
  0x9a   :  { %1091 = vmatpush3.bf16.msra.mxu0 %v1171_v12 }
  0x9b   :  { %1092 = vmatprep.subr.bf16.mxu0 %v1279_v44 }
  0x9e   :  { %1093 = vmatpush3.bf16.msra.mxu0 %v1172_v13 }
  0x9f   :  { %1094 = vmatprep.subr.bf16.mxu0 %v1279_v44 }
  0xa2   :  { %1095 = vmatpush3.bf16.msra.mxu0 %v1173_v40 }
  0xa3   :  { %1096 = vmatprep.subr.bf16.mxu0 %v1279_v44 }
  0xa6   :  { %1097 = vmatpush3.bf16.msra.mxu0 %v1174_v41 }
 0x13c   :  { %v986_v14 = vpop.f32.mrb[0].mxu0 }
 0x13d   :  { %v987_v16 = vpop.f32.mrb[1].mxu0 }
 0x13e   :  { %v988_v17 = vadd.f32 %v987_v16, %v986_v14  ;;  %v989_v18 = vpop.f32.mrb[2].mxu0  ;;  %v1008_v19 = vpop.f32.mrb[0].mxu1 }
 0x13f   :  { %v990_v20 = vpop.f32.mrb[3].mxu0  ;;  %v1009_v22 = vpop.f32.mrb[1].mxu1 }
 0x140   :  { %v532_v21 = vadd.f32 %v988_v17, %v901_v15  ;;  %v1010_v23 = vadd.f32 %v1009_v22, %v1008_v19  ;;  %v1011_v24 = vpop.f32.mrb[2].mxu1 }
 0x141   :  { %v1012_v25 = vpop.f32.mrb[3].mxu1 }
 0x142   :  { %v572_v26 = vadd.f32 %v1010_v23, %v532_v21 }
 0x146   :  { %v651_v27 = vpop.f32.mrb[4].mxu1 }
 0x147   :  { %v1060_v28 = vpop.f32.mrb[5].mxu1 }
 0x148   :  { %v654_v29 = vpop.f32.mrb[6].mxu1 }
 0x149   :  { %v1061_v30 = vpop.f32.mrb[7].mxu1 }
 0x15c   :  { %v1030_v31 = vpop.f32.mrb[4].mxu0 }
 0x15d   :  { %v1031_v32 = vpop.f32.mrb[5].mxu0 }
 0x15e   :  { %v1032_v33 = vadd.f32 %v1031_v32, %v1030_v31  ;;  %v1033_v34 = vpop.f32.mrb[6].mxu0 }
 0x15f   :  { %v1034_v35 = vpop.f32.mrb[7].mxu0 }
 0x160   :  { %v612_v36 = vadd.f32 %v1032_v33, %v572_v26 }
 0x162   :  { %v652_v37 = vadd.f32 %v651_v27, %v612_v36 }
 0x164   :  { %v657_v38 = vmax.f32 %v652_v37, 0.0 }
 0x166   :  { %v658_v39 = vpack.c.bf16 %v657_v38, %v657_v38 }
 0x168   :  { %1079 = vmatmul.mubr.bf16.vlgmr.msra.gmra.mrb[8].mxu1 %v658_v39 }
 0x23b   :  { %v764_v43 = vpop.f32.mrb[8].mxu1 }
 0x23c   :  { %v765_v45 = vadd.f32 %v952_v42, %v764_v43  ;;  %v1080_v46 = vpop.f32.mrb[9].mxu1 }
 0x23d   :  { %v767_v47 = vpop.f32.mrb[10].mxu1 }
 0x23e   :  { %v770_v48 = vmax.f32 %v765_v45, 0.0  ;;  %v1081_v49 = vpop.f32.mrb[11].mxu1 }
 0x240   :  { %v771_v50 = vpack.c.bf16 %v770_v48, %v770_v48 }
 0x242   :  { %1099 = vmatmul.mubr.bf16.vlgmr.msra.gmra.mrb[8].mxu0 %v771_v50 }
 0x315   :  { %v877_v52 = vpop.f32.mrb[8].mxu0 }
 0x316   :  { %v878_v44 = vadd.f32 %v961_v51, %v877_v52  ;;  %v1100_v53 = vpop.f32.mrb[9].mxu0 }
 0x317   :  { %v880_v54 = vpop.f32.mrb[10].mxu0 }
 0x318   :  { %883 = vmax.xlane.f32.xlu0 %v878_v44  ;;  %v1101_v55 = vpop.f32.mrb[11].mxu0 }
 0x3a5   :  { %v884_v56 = vpop.xlane.xlu0 %883 }
 0x3a6   :  { %v885_v57 = vsub.f32 %v878_v44, %v884_v56 }
 0x3a8   :  { %v886_v58 = vmul.f32 1.442695, %v885_v57 }
 0x3aa   :  { %1175 = vpow2.f32 %v886_v58 }
 0x3b4   :  { %v1176_v59 = vpop.eup %1175 }
 0x3b5   :  { %888 = vadd.xlane.f32.xlu0 %v1176_v59 }
 0x442   :  { %v889_v60 = vpop.xlane.xlu0 %888 }
 0x443   :  { %1177 = vrcp.f32 %v889_v60 }
 0x44d   :  { %v1178_v61 = vpop.eup %1177 }
 0x44e   :  { %v891_v62 = vmul.f32 %v1178_v61, %v1176_v59 }
 0x450   :  { %v892_v63 = vpack.c.bf16 %v891_v62, %v891_v62 }
 0x452   :  { %893 = vst [vmem:[%s1420_s7] sm:$0xf] %v892_v63 }
 0x453   :  { %898 = vsyncpa [#allocation3], 1 }
 0x454   :  { %899 = vsyncpa [#allocation5], 1 }
 0x455   :  { %900 = vsyncpa [#allocation8], 1 }

</bundles_post_ra>
